<compile_context>
chip_gen: v7x
topology: tpu7x:2x2x1
jax: 0.10.0
libtpu: 0.0.40
codegen_flags: <defaults>
</compile_context>

<pallas_src>
import functools

import jax
import jax.numpy as jnp
from jax import lax
from jax.experimental import pallas as pl
from jax.experimental.pallas import tpu as pltpu


def _round_up(x, m):
    return (x + m - 1) // m * m


# ---------------------------------------------------------------------------
# Stage A: vmean[b, :] = (1/S) * sum_s emb[x[b, s], :]
# ---------------------------------------------------------------------------

def _gather_mean_dma_kernel(idx_ref, emb_hbm, vmean_ref, gbuf_ref, sem,
                            *, seq_len, block_b):
    """General path: table stays in HBM; rows are bulk-DMA gathered.

    idx_ref : SMEM (Bp*S,) int32  -- scalar-prefetched, flattened token ids
    emb_hbm : ANY  (Vp, Ep)       -- embedding table (gathered row by row)
    vmean   : VMEM (block_b, Ep)  -- output tile (mean embedding per row)
    gbuf    : VMEM (S, block_b, Ep) scratch -- all gathered rows of this tile
    sem     : DMA semaphores (S,)
    """
    i = pl.program_id(0)
    base = i * block_b                      # first (padded) batch row of tile
    inv_s = jnp.float32(1.0 / seq_len)

    # Issue ALL block_b * seq_len row DMAs up front so they are in flight
    # together (the gather is descriptor/latency bound otherwise).
    def issue(rr, carry):
        for s in range(seq_len):            # static, small
            tok = idx_ref[(base + rr) * seq_len + s]
            pltpu.make_async_copy(
                emb_hbm.at[tok], gbuf_ref.at[s, rr], sem.at[s]).start()
        return carry

    lax.fori_loop(0, block_b, issue, 0)

    # Drain: one wait per issued copy.  The wait descriptor is rebuilt from the
    # same SMEM ids, so it is byte-for-byte identical to the start descriptor.
    def drain(rr, carry):
        for s in range(seq_len):
            tok = idx_ref[(base + rr) * seq_len + s]
            pltpu.make_async_copy(
                emb_hbm.at[tok], gbuf_ref.at[s, rr], sem.at[s]).wait()
        return carry

    lax.fori_loop(0, block_b, drain, 0)

    # One vectorized reduction over the context window, 1/S folded in.
    acc = gbuf_ref[0].astype(jnp.float32)               # (block_b, Ep)
    for s in range(1, seq_len):
        acc = acc + gbuf_ref[s].astype(jnp.float32)
    vmean_ref[...] = (acc * inv_s).astype(vmean_ref.dtype)


def _gather_mean_vmem_kernel(idx_ref, emb_ref, vmean_ref, *, seq_len, block_b):
    """Small-table path: the whole (padded) table is resident in VMEM (one
    streaming DMA via BlockSpec); rows are gathered with dynamic-slice loads.

    TODO(synk): row-at-a-time (1, E) loads use a fraction of a vreg; vectorize
    over 8-row groups if this path ever dominates.
    """
    i = pl.program_id(0)
    base = i * block_b
    inv_s = jnp.float32(1.0 / seq_len)

    def row(rr, carry):
        tok0 = idx_ref[(base + rr) * seq_len]
        acc = emb_ref[pl.ds(tok0, 1), :].astype(jnp.float32)      # (1, Ep)
        for s in range(1, seq_len):
            tok = idx_ref[(base + rr) * seq_len + s]
            acc = acc + emb_ref[pl.ds(tok, 1), :].astype(jnp.float32)
        vmean_ref[pl.ds(rr, 1), :] = (acc * inv_s).astype(vmean_ref.dtype)
        return carry

    lax.fori_loop(0, block_b, row, 0)


# ---------------------------------------------------------------------------
# Stage B: out = vmean @ W.T + bias   (vocab-outer tiled GEMM)
# ---------------------------------------------------------------------------

def _linear_kernel(vmean_ref, w_ref, b_ref, out_ref):
    out = lax.dot_general(
        vmean_ref[...], w_ref[...],
        dimension_numbers=(((1,), (1,)), ((), ())),     # contract E with E
        preferred_element_type=jnp.float32,
    )                                                   # (block_b, block_v)
    out_ref[...] = (out + b_ref[...]).astype(out_ref.dtype)


# ---------------------------------------------------------------------------
# Wrapper
# ---------------------------------------------------------------------------

def cbow_forward(x_idx, emb_table, lin_weight, lin_bias, *,
                 mxu_dtype=jnp.bfloat16, block_b=None, block_v=None,
                 use_vmem_table=None):
    """CBoW forward.

    x_idx:      (B, S) int token ids
    emb_table:  (V, E) embedding weight
    lin_weight: (V, E) output-layer weight (PyTorch Linear layout, NOT transposed)
    lin_bias:   (V,)   output-layer bias
    returns     (B, V) float32 logits
    """
    B, S = x_idx.shape
    V, E = emb_table.shape
    assert lin_weight.shape == (V, E) and lin_bias.shape == (V,)

    f32 = jnp.float32
    Ep = _round_up(E, 128)
    if block_v is None:
        block_v = min(2048, _round_up(V, 128))          # lane-dense, big W tiles
    Vp = _round_up(V, block_v)
    if block_b is None:
        # 256 matches the 256-wide MXU on v6e/v7x (prefer 128 on v5e); tiny
        # batches only round up to a full sublane group.
        block_b = 256 if B >= 256 else (128 if B >= 128 else _round_up(B, 8))
    Bp = _round_up(B, block_b)

    # Padded, mxu_dtype parameter copies.  Padded vocab rows are never gathered
    # (ids are clipped) and padded weight rows / bias cols only feed output
    # columns that are sliced off below.
    emb_p = jnp.zeros((Vp, Ep), mxu_dtype).at[:V, :E].set(emb_table.astype(mxu_dtype))
    w_p = jnp.zeros((Vp, Ep), mxu_dtype).at[:V, :E].set(lin_weight.astype(mxu_dtype))
    bias_p = jnp.zeros((1, Vp), f32).at[0, :V].set(lin_bias.astype(f32))

    # Flattened 1-D id array for SMEM scalar prefetch (2-D pads to 128 cols).
    # TODO(synk): ids are clipped instead of raising like nn.Embedding does for
    # out-of-range indices.
    idx_flat = jnp.zeros((Bp * S,), jnp.int32).at[: B * S].set(
        jnp.clip(x_idx.astype(jnp.int32), 0, V - 1).reshape(-1))

    nb = Bp // block_b
    nv = Vp // block_v

    if use_vmem_table is None:
        table_bytes = Vp * Ep * jnp.dtype(mxu_dtype).itemsize
        use_vmem_table = 2 * table_bytes <= (8 << 20)   # 2x: double-buffered

    # ---- Stage A: gather + mean ---------------------------------------------
    if use_vmem_table:
        gather_kernel = functools.partial(
            _gather_mean_vmem_kernel, seq_len=S, block_b=block_b)
        emb_spec = pl.BlockSpec((Vp, Ep), lambda i, idx: (0, 0))  # table -> VMEM once
        scratch = []
    else:
        gather_kernel = functools.partial(
            _gather_mean_dma_kernel, seq_len=S, block_b=block_b)
        emb_spec = pl.BlockSpec(memory_space=pl.ANY)              # table stays in HBM
        scratch = [pltpu.VMEM((S, block_b, Ep), mxu_dtype),
                   pltpu.SemaphoreType.DMA((S,))]

    vmean = pl.pallas_call(
        gather_kernel,
        out_shape=jax.ShapeDtypeStruct((Bp, Ep), mxu_dtype),
        grid_spec=pltpu.PrefetchScalarGridSpec(
            num_scalar_prefetch=1,                      # flattened ids -> SMEM
            grid=(nb,),
            in_specs=[emb_spec],
            out_specs=pl.BlockSpec((block_b, Ep), lambda i, idx: (i, 0)),
            scratch_shapes=scratch,
        ),
        compiler_params=pltpu.CompilerParams(
            dimension_semantics=("parallel",),
            vmem_limit_bytes=32 << 20,                  # v7x-safe budget
        ),
    )(idx_flat, emb_p)

    # ---- Stage B: vocab-outer GEMM (each W tile streamed from HBM once) -----
    out = pl.pallas_call(
        _linear_kernel,
        out_shape=jax.ShapeDtypeStruct((Bp, Vp), f32),
        grid_spec=pltpu.PrefetchScalarGridSpec(
            num_scalar_prefetch=0,
            grid=(nv, nb),                              # vocab outer, batch inner
            in_specs=[
                pl.BlockSpec((block_b, Ep), lambda v, b: (b, 0)),   # vmean tile
                pl.BlockSpec((block_v, Ep), lambda v, b: (v, 0)),   # W tile (const over b)
                pl.BlockSpec((1, block_v), lambda v, b: (0, v)),    # bias tile (const over b)
            ],
            out_specs=pl.BlockSpec((block_b, block_v), lambda v, b: (b, v)),
        ),
        compiler_params=pltpu.CompilerParams(
            dimension_semantics=("parallel", "parallel"),
            vmem_limit_bytes=32 << 20,
        ),
    )(vmean, w_p, bias_p)

    return out[:B, :V]


def cbow_reference(x_idx, emb_table, lin_weight, lin_bias):
    emb = emb_table[x_idx]                               # (B, S, E)
    v = jnp.mean(emb, axis=1)                            # (B, E)
    return jnp.dot(v, lin_weight.T, precision=lax.Precision.HIGHEST) + lin_bias


if __name__ == "__main__":
    vocab_size = 256
    embedding_size = 128
    batch = 16
    seq = 8

    key = jax.random.PRNGKey(0)
    k_emb, k_w, k_b, k_x = jax.random.split(key, 4)

    # Deterministic parameter init (shapes from the module's __init__).
    emb_table = jax.random.normal(k_emb, (vocab_size, embedding_size), jnp.float32)
    bound = 1.0 / jnp.sqrt(embedding_size)
    lin_weight = jax.random.uniform(k_w, (vocab_size, embedding_size),
                                    jnp.float32, -bound, bound)
    lin_bias = jax.random.uniform(k_b, (vocab_size,), jnp.float32, -bound, bound)
    x_idx = jax.random.randint(k_x, (batch, seq), 0, vocab_size, jnp.int32)

    ref = cbow_reference(x_idx, emb_table, lin_weight, lin_bias)

    # 1) f32 + HBM bulk-DMA gather path; small tiles so the test exercises a
    #    multi-tile grid in both stages (2 batch tiles x 2 vocab tiles).
    out_f32 = cbow_forward(x_idx, emb_table, lin_weight, lin_bias,
                           mxu_dtype=jnp.float32, block_b=8, block_v=128,
                           use_vmem_table=False)
    out_f32 = jax.block_until_ready(out_f32)
    assert out_f32.shape == (batch, vocab_size)
    assert jnp.allclose(out_f32, ref, atol=2e-3, rtol=2e-3), "f32/DMA path mismatch"

    # 2) Production defaults: bf16 table/weights on the MXU (f32 accumulation),
    #    VMEM-resident table (it easily fits), default tile sizes.
    out_bf16 = cbow_forward(x_idx, emb_table, lin_weight, lin_bias)
    out_bf16 = jax.block_until_ready(out_bf16)
    assert out_bf16.shape == (batch, vocab_size)
    assert jnp.allclose(out_bf16, ref, atol=2e-2, rtol=2e-2), "bf16/VMEM path mismatch"

    print("KERNEL_OK")
</pallas_src>

<mosaic_0001>
module attributes {stable_mosaic.version = 11 : i64} {
  func.func @_gather_mean_dma_kernel(%arg0: i32, %arg1: memref<128xi32, #tpu.memory_space<smem>>, %arg2: memref<256x128xf32, #tpu.memory_space<any>>, %arg3: memref<8x128xf32, #tpu.memory_space<vmem>>, %arg4: memref<8x8x128xf32, #tpu.memory_space<vmem>>, %arg5: memref<8x!tpu.dma_semaphore, #tpu.memory_space<semaphore_mem>>) attributes {dimension_semantics = [#tpu.dimension_semantics<parallel>], iteration_bounds = array<i64: 2>, scalar_prefetch = 1 : i64, scratch_operands = 2 : i64, tpu.core_type = #tpu.core_type<tc>, window_params = [{}, {transform_indices = @transform_1, window_bounds = array<i64: 8, 128>}]} {
    %c8_i32 = arith.constant 8 : i32
    %0 = arith.muli %arg0, %c8_i32 : i32
    %c0_i32 = arith.constant 0 : i32
    %c8_i32_0 = arith.constant 8 : i32
    %1 = arith.addi %c0_i32, %c8_i32_0 : i32
    %c1_i32 = arith.constant 1 : i32
    scf.for %arg6 = %c0_i32 to %1 step %c1_i32  : i32 {
      %29 = arith.addi %0, %arg6 : i32
      %c8_i32_24 = arith.constant 8 : i32
      %30 = arith.muli %29, %c8_i32_24 : i32
      %c0_i32_25 = arith.constant 0 : i32
      %31 = arith.addi %30, %c0_i32_25 : i32
      %32 = arith.index_cast %31 : i32 to index
      %33 = memref.load %arg1[%32] : memref<128xi32, #tpu.memory_space<smem>>
      %c0_i32_26 = arith.constant 0 : i32
      %c0_i32_27 = arith.constant 0 : i32
      %c0_i32_28 = arith.constant 0 : i32
      %34 = tpu.memref_slice %arg2[%33, %c0_i32_28] : memref<256x128xf32, #tpu.memory_space<any>> -> memref<1x128xf32, #tpu.memory_space<any>>
      %35 = tpu.memref_squeeze %34 : memref<1x128xf32, #tpu.memory_space<any>> -> memref<128xf32, #tpu.memory_space<any>>
      %c0_i32_29 = arith.constant 0 : i32
      %36 = tpu.memref_slice %arg4[%c0_i32_26, %arg6, %c0_i32_29] : memref<8x8x128xf32, #tpu.memory_space<vmem>> -> memref<1x1x128xf32, #tpu.memory_space<vmem>>
      %37 = tpu.memref_squeeze %36 : memref<1x1x128xf32, #tpu.memory_space<vmem>> -> memref<128xf32, #tpu.memory_space<vmem>>
      %38 = tpu.memref_slice %arg5[%c0_i32_27] : memref<8x!tpu.dma_semaphore, #tpu.memory_space<semaphore_mem>> -> memref<1x!tpu.dma_semaphore, #tpu.memory_space<semaphore_mem>>
      %39 = tpu.memref_squeeze %38 : memref<1x!tpu.dma_semaphore, #tpu.memory_space<semaphore_mem>> -> memref<!tpu.dma_semaphore, #tpu.memory_space<semaphore_mem>>
      tpu.enqueue_dma source(%35 : memref<128xf32, #tpu.memory_space<any>>) target(%37 : memref<128xf32, #tpu.memory_space<vmem>>) target_semaphore(%39 : memref<!tpu.dma_semaphore, #tpu.memory_space<semaphore_mem>>)
      %40 = arith.addi %0, %arg6 : i32
      %c8_i32_30 = arith.constant 8 : i32
      %41 = arith.muli %40, %c8_i32_30 : i32
      %c1_i32_31 = arith.constant 1 : i32
      %42 = arith.addi %41, %c1_i32_31 : i32
      %43 = arith.index_cast %42 : i32 to index
      %44 = memref.load %arg1[%43] : memref<128xi32, #tpu.memory_space<smem>>
      %c1_i32_32 = arith.constant 1 : i32
      %c1_i32_33 = arith.constant 1 : i32
      %c0_i32_34 = arith.constant 0 : i32
      %45 = tpu.memref_slice %arg2[%44, %c0_i32_34] : memref<256x128xf32, #tpu.memory_space<any>> -> memref<1x128xf32, #tpu.memory_space<any>>
      %46 = tpu.memref_squeeze %45 : memref<1x128xf32, #tpu.memory_space<any>> -> memref<128xf32, #tpu.memory_space<any>>
      %c0_i32_35 = arith.constant 0 : i32
      %47 = tpu.memref_slice %arg4[%c1_i32_32, %arg6, %c0_i32_35] : memref<8x8x128xf32, #tpu.memory_space<vmem>> -> memref<1x1x128xf32, #tpu.memory_space<vmem>>
      %48 = tpu.memref_squeeze %47 : memref<1x1x128xf32, #tpu.memory_space<vmem>> -> memref<128xf32, #tpu.memory_space<vmem>>
      %49 = tpu.memref_slice %arg5[%c1_i32_33] : memref<8x!tpu.dma_semaphore, #tpu.memory_space<semaphore_mem>> -> memref<1x!tpu.dma_semaphore, #tpu.memory_space<semaphore_mem>>
      %50 = tpu.memref_squeeze %49 : memref<1x!tpu.dma_semaphore, #tpu.memory_space<semaphore_mem>> -> memref<!tpu.dma_semaphore, #tpu.memory_space<semaphore_mem>>
      tpu.enqueue_dma source(%46 : memref<128xf32, #tpu.memory_space<any>>) target(%48 : memref<128xf32, #tpu.memory_space<vmem>>) target_semaphore(%50 : memref<!tpu.dma_semaphore, #tpu.memory_space<semaphore_mem>>)
      %51 = arith.addi %0, %arg6 : i32
      %c8_i32_36 = arith.constant 8 : i32
      %52 = arith.muli %51, %c8_i32_36 : i32
      %c2_i32 = arith.constant 2 : i32
      %53 = arith.addi %52, %c2_i32 : i32
      %54 = arith.index_cast %53 : i32 to index
      %55 = memref.load %arg1[%54] : memref<128xi32, #tpu.memory_space<smem>>
      %c2_i32_37 = arith.constant 2 : i32
      %c2_i32_38 = arith.constant 2 : i32
      %c0_i32_39 = arith.constant 0 : i32
      %56 = tpu.memref_slice %arg2[%55, %c0_i32_39] : memref<256x128xf32, #tpu.memory_space<any>> -> memref<1x128xf32, #tpu.memory_space<any>>
      %57 = tpu.memref_squeeze %56 : memref<1x128xf32, #tpu.memory_space<any>> -> memref<128xf32, #tpu.memory_space<any>>
      %c0_i32_40 = arith.constant 0 : i32
      %58 = tpu.memref_slice %arg4[%c2_i32_37, %arg6, %c0_i32_40] : memref<8x8x128xf32, #tpu.memory_space<vmem>> -> memref<1x1x128xf32, #tpu.memory_space<vmem>>
      %59 = tpu.memref_squeeze %58 : memref<1x1x128xf32, #tpu.memory_space<vmem>> -> memref<128xf32, #tpu.memory_space<vmem>>
      %60 = tpu.memref_slice %arg5[%c2_i32_38] : memref<8x!tpu.dma_semaphore, #tpu.memory_space<semaphore_mem>> -> memref<1x!tpu.dma_semaphore, #tpu.memory_space<semaphore_mem>>
      %61 = tpu.memref_squeeze %60 : memref<1x!tpu.dma_semaphore, #tpu.memory_space<semaphore_mem>> -> memref<!tpu.dma_semaphore, #tpu.memory_space<semaphore_mem>>
      tpu.enqueue_dma source(%57 : memref<128xf32, #tpu.memory_space<any>>) target(%59 : memref<128xf32, #tpu.memory_space<vmem>>) target_semaphore(%61 : memref<!tpu.dma_semaphore, #tpu.memory_space<semaphore_mem>>)
      %62 = arith.addi %0, %arg6 : i32
      %c8_i32_41 = arith.constant 8 : i32
      %63 = arith.muli %62, %c8_i32_41 : i32
      %c3_i32 = arith.constant 3 : i32
      %64 = arith.addi %63, %c3_i32 : i32
      %65 = arith.index_cast %64 : i32 to index
      %66 = memref.load %arg1[%65] : memref<128xi32, #tpu.memory_space<smem>>
      %c3_i32_42 = arith.constant 3 : i32
      %c3_i32_43 = arith.constant 3 : i32
      %c0_i32_44 = arith.constant 0 : i32
      %67 = tpu.memref_slice %arg2[%66, %c0_i32_44] : memref<256x128xf32, #tpu.memory_space<any>> -> memref<1x128xf32, #tpu.memory_space<any>>
      %68 = tpu.memref_squeeze %67 : memref<1x128xf32, #tpu.memory_space<any>> -> memref<128xf32, #tpu.memory_space<any>>
      %c0_i32_45 = arith.constant 0 : i32
      %69 = tpu.memref_slice %arg4[%c3_i32_42, %arg6, %c0_i32_45] : memref<8x8x128xf32, #tpu.memory_space<vmem>> -> memref<1x1x128xf32, #tpu.memory_space<vmem>>
      %70 = tpu.memref_squeeze %69 : memref<1x1x128xf32, #tpu.memory_space<vmem>> -> memref<128xf32, #tpu.memory_space<vmem>>
      %71 = tpu.memref_slice %arg5[%c3_i32_43] : memref<8x!tpu.dma_semaphore, #tpu.memory_space<semaphore_mem>> -> memref<1x!tpu.dma_semaphore, #tpu.memory_space<semaphore_mem>>
      %72 = tpu.memref_squeeze %71 : memref<1x!tpu.dma_semaphore, #tpu.memory_space<semaphore_mem>> -> memref<!tpu.dma_semaphore, #tpu.memory_space<semaphore_mem>>
      tpu.enqueue_dma source(%68 : memref<128xf32, #tpu.memory_space<any>>) target(%70 : memref<128xf32, #tpu.memory_space<vmem>>) target_semaphore(%72 : memref<!tpu.dma_semaphore, #tpu.memory_space<semaphore_mem>>)
      %73 = arith.addi %0, %arg6 : i32
      %c8_i32_46 = arith.constant 8 : i32
      %74 = arith.muli %73, %c8_i32_46 : i32
      %c4_i32 = arith.constant 4 : i32
      %75 = arith.addi %74, %c4_i32 : i32
      %76 = arith.index_cast %75 : i32 to index
      %77 = memref.load %arg1[%76] : memref<128xi32, #tpu.memory_space<smem>>
      %c4_i32_47 = arith.constant 4 : i32
      %c4_i32_48 = arith.constant 4 : i32
      %c0_i32_49 = arith.constant 0 : i32
      %78 = tpu.memref_slice %arg2[%77, %c0_i32_49] : memref<256x128xf32, #tpu.memory_space<any>> -> memref<1x128xf32, #tpu.memory_space<any>>
      %79 = tpu.memref_squeeze %78 : memref<1x128xf32, #tpu.memory_space<any>> -> memref<128xf32, #tpu.memory_space<any>>
      %c0_i32_50 = arith.constant 0 : i32
      %80 = tpu.memref_slice %arg4[%c4_i32_47, %arg6, %c0_i32_50] : memref<8x8x128xf32, #tpu.memory_space<vmem>> -> memref<1x1x128xf32, #tpu.memory_space<vmem>>
      %81 = tpu.memref_squeeze %80 : memref<1x1x128xf32, #tpu.memory_space<vmem>> -> memref<128xf32, #tpu.memory_space<vmem>>
      %82 = tpu.memref_slice %arg5[%c4_i32_48] : memref<8x!tpu.dma_semaphore, #tpu.memory_space<semaphore_mem>> -> memref<1x!tpu.dma_semaphore, #tpu.memory_space<semaphore_mem>>
      %83 = tpu.memref_squeeze %82 : memref<1x!tpu.dma_semaphore, #tpu.memory_space<semaphore_mem>> -> memref<!tpu.dma_semaphore, #tpu.memory_space<semaphore_mem>>
      tpu.enqueue_dma source(%79 : memref<128xf32, #tpu.memory_space<any>>) target(%81 : memref<128xf32, #tpu.memory_space<vmem>>) target_semaphore(%83 : memref<!tpu.dma_semaphore, #tpu.memory_space<semaphore_mem>>)
      %84 = arith.addi %0, %arg6 : i32
      %c8_i32_51 = arith.constant 8 : i32
      %85 = arith.muli %84, %c8_i32_51 : i32
      %c5_i32 = arith.constant 5 : i32
      %86 = arith.addi %85, %c5_i32 : i32
      %87 = arith.index_cast %86 : i32 to index
      %88 = memref.load %arg1[%87] : memref<128xi32, #tpu.memory_space<smem>>
      %c5_i32_52 = arith.constant 5 : i32
      %c5_i32_53 = arith.constant 5 : i32
      %c0_i32_54 = arith.constant 0 : i32
      %89 = tpu.memref_slice %arg2[%88, %c0_i32_54] : memref<256x128xf32, #tpu.memory_space<any>> -> memref<1x128xf32, #tpu.memory_space<any>>
      %90 = tpu.memref_squeeze %89 : memref<1x128xf32, #tpu.memory_space<any>> -> memref<128xf32, #tpu.memory_space<any>>
      %c0_i32_55 = arith.constant 0 : i32
      %91 = tpu.memref_slice %arg4[%c5_i32_52, %arg6, %c0_i32_55] : memref<8x8x128xf32, #tpu.memory_space<vmem>> -> memref<1x1x128xf32, #tpu.memory_space<vmem>>
      %92 = tpu.memref_squeeze %91 : memref<1x1x128xf32, #tpu.memory_space<vmem>> -> memref<128xf32, #tpu.memory_space<vmem>>
      %93 = tpu.memref_slice %arg5[%c5_i32_53] : memref<8x!tpu.dma_semaphore, #tpu.memory_space<semaphore_mem>> -> memref<1x!tpu.dma_semaphore, #tpu.memory_space<semaphore_mem>>
      %94 = tpu.memref_squeeze %93 : memref<1x!tpu.dma_semaphore, #tpu.memory_space<semaphore_mem>> -> memref<!tpu.dma_semaphore, #tpu.memory_space<semaphore_mem>>
      tpu.enqueue_dma source(%90 : memref<128xf32, #tpu.memory_space<any>>) target(%92 : memref<128xf32, #tpu.memory_space<vmem>>) target_semaphore(%94 : memref<!tpu.dma_semaphore, #tpu.memory_space<semaphore_mem>>)
      %95 = arith.addi %0, %arg6 : i32
      %c8_i32_56 = arith.constant 8 : i32
      %96 = arith.muli %95, %c8_i32_56 : i32
      %c6_i32 = arith.constant 6 : i32
      %97 = arith.addi %96, %c6_i32 : i32
      %98 = arith.index_cast %97 : i32 to index
      %99 = memref.load %arg1[%98] : memref<128xi32, #tpu.memory_space<smem>>
      %c6_i32_57 = arith.constant 6 : i32
      %c6_i32_58 = arith.constant 6 : i32
      %c0_i32_59 = arith.constant 0 : i32
      %100 = tpu.memref_slice %arg2[%99, %c0_i32_59] : memref<256x128xf32, #tpu.memory_space<any>> -> memref<1x128xf32, #tpu.memory_space<any>>
      %101 = tpu.memref_squeeze %100 : memref<1x128xf32, #tpu.memory_space<any>> -> memref<128xf32, #tpu.memory_space<any>>
      %c0_i32_60 = arith.constant 0 : i32
      %102 = tpu.memref_slice %arg4[%c6_i32_57, %arg6, %c0_i32_60] : memref<8x8x128xf32, #tpu.memory_space<vmem>> -> memref<1x1x128xf32, #tpu.memory_space<vmem>>
      %103 = tpu.memref_squeeze %102 : memref<1x1x128xf32, #tpu.memory_space<vmem>> -> memref<128xf32, #tpu.memory_space<vmem>>
      %104 = tpu.memref_slice %arg5[%c6_i32_58] : memref<8x!tpu.dma_semaphore, #tpu.memory_space<semaphore_mem>> -> memref<1x!tpu.dma_semaphore, #tpu.memory_space<semaphore_mem>>
      %105 = tpu.memref_squeeze %104 : memref<1x!tpu.dma_semaphore, #tpu.memory_space<semaphore_mem>> -> memref<!tpu.dma_semaphore, #tpu.memory_space<semaphore_mem>>
      tpu.enqueue_dma source(%101 : memref<128xf32, #tpu.memory_space<any>>) target(%103 : memref<128xf32, #tpu.memory_space<vmem>>) target_semaphore(%105 : memref<!tpu.dma_semaphore, #tpu.memory_space<semaphore_mem>>)
      %106 = arith.addi %0, %arg6 : i32
      %c8_i32_61 = arith.constant 8 : i32
      %107 = arith.muli %106, %c8_i32_61 : i32
      %c7_i32 = arith.constant 7 : i32
      %108 = arith.addi %107, %c7_i32 : i32
      %109 = arith.index_cast %108 : i32 to index
      %110 = memref.load %arg1[%109] : memref<128xi32, #tpu.memory_space<smem>>
      %c7_i32_62 = arith.constant 7 : i32
      %c7_i32_63 = arith.constant 7 : i32
      %c0_i32_64 = arith.constant 0 : i32
      %111 = tpu.memref_slice %arg2[%110, %c0_i32_64] : memref<256x128xf32, #tpu.memory_space<any>> -> memref<1x128xf32, #tpu.memory_space<any>>
      %112 = tpu.memref_squeeze %111 : memref<1x128xf32, #tpu.memory_space<any>> -> memref<128xf32, #tpu.memory_space<any>>
      %c0_i32_65 = arith.constant 0 : i32
      %113 = tpu.memref_slice %arg4[%c7_i32_62, %arg6, %c0_i32_65] : memref<8x8x128xf32, #tpu.memory_space<vmem>> -> memref<1x1x128xf32, #tpu.memory_space<vmem>>
      %114 = tpu.memref_squeeze %113 : memref<1x1x128xf32, #tpu.memory_space<vmem>> -> memref<128xf32, #tpu.memory_space<vmem>>
      %115 = tpu.memref_slice %arg5[%c7_i32_63] : memref<8x!tpu.dma_semaphore, #tpu.memory_space<semaphore_mem>> -> memref<1x!tpu.dma_semaphore, #tpu.memory_space<semaphore_mem>>
      %116 = tpu.memref_squeeze %115 : memref<1x!tpu.dma_semaphore, #tpu.memory_space<semaphore_mem>> -> memref<!tpu.dma_semaphore, #tpu.memory_space<semaphore_mem>>
      tpu.enqueue_dma source(%112 : memref<128xf32, #tpu.memory_space<any>>) target(%114 : memref<128xf32, #tpu.memory_space<vmem>>) target_semaphore(%116 : memref<!tpu.dma_semaphore, #tpu.memory_space<semaphore_mem>>)
    }
    %c8_i32_1 = arith.constant 8 : i32
    %c0_i32_2 = arith.constant 0 : i32
    %c8_i32_3 = arith.constant 8 : i32
    %2 = arith.addi %c0_i32_2, %c8_i32_3 : i32
    %c1_i32_4 = arith.constant 1 : i32
    scf.for %arg6 = %c0_i32_2 to %2 step %c1_i32_4  : i32 {
      %29 = arith.addi %0, %arg6 : i32
      %c8_i32_24 = arith.constant 8 : i32
      %30 = arith.muli %29, %c8_i32_24 : i32
      %c0_i32_25 = arith.constant 0 : i32
      %31 = arith.addi %30, %c0_i32_25 : i32
      %32 = arith.index_cast %31 : i32 to index
      %33 = memref.load %arg1[%32] : memref<128xi32, #tpu.memory_space<smem>>
      %c0_i32_26 = arith.constant 0 : i32
      %c0_i32_27 = arith.constant 0 : i32
      %c0_i32_28 = arith.constant 0 : i32
      %34 = tpu.memref_slice %arg2[%33, %c0_i32_28] : memref<256x128xf32, #tpu.memory_space<any>> -> memref<1x128xf32, #tpu.memory_space<any>>
      %35 = tpu.memref_squeeze %34 : memref<1x128xf32, #tpu.memory_space<any>> -> memref<128xf32, #tpu.memory_space<any>>
      %c0_i32_29 = arith.constant 0 : i32
      %36 = tpu.memref_slice %arg4[%c0_i32_26, %arg6, %c0_i32_29] : memref<8x8x128xf32, #tpu.memory_space<vmem>> -> memref<1x1x128xf32, #tpu.memory_space<vmem>>
      %37 = tpu.memref_squeeze %36 : memref<1x1x128xf32, #tpu.memory_space<vmem>> -> memref<128xf32, #tpu.memory_space<vmem>>
      %38 = tpu.memref_slice %arg5[%c0_i32_27] : memref<8x!tpu.dma_semaphore, #tpu.memory_space<semaphore_mem>> -> memref<1x!tpu.dma_semaphore, #tpu.memory_space<semaphore_mem>>
      %39 = tpu.memref_squeeze %38 : memref<1x!tpu.dma_semaphore, #tpu.memory_space<semaphore_mem>> -> memref<!tpu.dma_semaphore, #tpu.memory_space<semaphore_mem>>
      tpu.wait_dma2 semaphore(%39 : memref<!tpu.dma_semaphore, #tpu.memory_space<semaphore_mem>>) src(%35 : memref<128xf32, #tpu.memory_space<any>>) dst(%37 : memref<128xf32, #tpu.memory_space<vmem>>)
      %40 = arith.addi %0, %arg6 : i32
      %c8_i32_30 = arith.constant 8 : i32
      %41 = arith.muli %40, %c8_i32_30 : i32
      %c1_i32_31 = arith.constant 1 : i32
      %42 = arith.addi %41, %c1_i32_31 : i32
      %43 = arith.index_cast %42 : i32 to index
      %44 = memref.load %arg1[%43] : memref<128xi32, #tpu.memory_space<smem>>
      %c1_i32_32 = arith.constant 1 : i32
      %c1_i32_33 = arith.constant 1 : i32
      %c0_i32_34 = arith.constant 0 : i32
      %45 = tpu.memref_slice %arg2[%44, %c0_i32_34] : memref<256x128xf32, #tpu.memory_space<any>> -> memref<1x128xf32, #tpu.memory_space<any>>
      %46 = tpu.memref_squeeze %45 : memref<1x128xf32, #tpu.memory_space<any>> -> memref<128xf32, #tpu.memory_space<any>>
      %c0_i32_35 = arith.constant 0 : i32
      %47 = tpu.memref_slice %arg4[%c1_i32_32, %arg6, %c0_i32_35] : memref<8x8x128xf32, #tpu.memory_space<vmem>> -> memref<1x1x128xf32, #tpu.memory_space<vmem>>
      %48 = tpu.memref_squeeze %47 : memref<1x1x128xf32, #tpu.memory_space<vmem>> -> memref<128xf32, #tpu.memory_space<vmem>>
      %49 = tpu.memref_slice %arg5[%c1_i32_33] : memref<8x!tpu.dma_semaphore, #tpu.memory_space<semaphore_mem>> -> memref<1x!tpu.dma_semaphore, #tpu.memory_space<semaphore_mem>>
      %50 = tpu.memref_squeeze %49 : memref<1x!tpu.dma_semaphore, #tpu.memory_space<semaphore_mem>> -> memref<!tpu.dma_semaphore, #tpu.memory_space<semaphore_mem>>
      tpu.wait_dma2 semaphore(%50 : memref<!tpu.dma_semaphore, #tpu.memory_space<semaphore_mem>>) src(%46 : memref<128xf32, #tpu.memory_space<any>>) dst(%48 : memref<128xf32, #tpu.memory_space<vmem>>)
      %51 = arith.addi %0, %arg6 : i32
      %c8_i32_36 = arith.constant 8 : i32
      %52 = arith.muli %51, %c8_i32_36 : i32
      %c2_i32 = arith.constant 2 : i32
      %53 = arith.addi %52, %c2_i32 : i32
      %54 = arith.index_cast %53 : i32 to index
      %55 = memref.load %arg1[%54] : memref<128xi32, #tpu.memory_space<smem>>
      %c2_i32_37 = arith.constant 2 : i32
      %c2_i32_38 = arith.constant 2 : i32
      %c0_i32_39 = arith.constant 0 : i32
      %56 = tpu.memref_slice %arg2[%55, %c0_i32_39] : memref<256x128xf32, #tpu.memory_space<any>> -> memref<1x128xf32, #tpu.memory_space<any>>
      %57 = tpu.memref_squeeze %56 : memref<1x128xf32, #tpu.memory_space<any>> -> memref<128xf32, #tpu.memory_space<any>>
      %c0_i32_40 = arith.constant 0 : i32
      %58 = tpu.memref_slice %arg4[%c2_i32_37, %arg6, %c0_i32_40] : memref<8x8x128xf32, #tpu.memory_space<vmem>> -> memref<1x1x128xf32, #tpu.memory_space<vmem>>
      %59 = tpu.memref_squeeze %58 : memref<1x1x128xf32, #tpu.memory_space<vmem>> -> memref<128xf32, #tpu.memory_space<vmem>>
      %60 = tpu.memref_slice %arg5[%c2_i32_38] : memref<8x!tpu.dma_semaphore, #tpu.memory_space<semaphore_mem>> -> memref<1x!tpu.dma_semaphore, #tpu.memory_space<semaphore_mem>>
      %61 = tpu.memref_squeeze %60 : memref<1x!tpu.dma_semaphore, #tpu.memory_space<semaphore_mem>> -> memref<!tpu.dma_semaphore, #tpu.memory_space<semaphore_mem>>
      tpu.wait_dma2 semaphore(%61 : memref<!tpu.dma_semaphore, #tpu.memory_space<semaphore_mem>>) src(%57 : memref<128xf32, #tpu.memory_space<any>>) dst(%59 : memref<128xf32, #tpu.memory_space<vmem>>)
      %62 = arith.addi %0, %arg6 : i32
      %c8_i32_41 = arith.constant 8 : i32
      %63 = arith.muli %62, %c8_i32_41 : i32
      %c3_i32 = arith.constant 3 : i32
      %64 = arith.addi %63, %c3_i32 : i32
      %65 = arith.index_cast %64 : i32 to index
      %66 = memref.load %arg1[%65] : memref<128xi32, #tpu.memory_space<smem>>
      %c3_i32_42 = arith.constant 3 : i32
      %c3_i32_43 = arith.constant 3 : i32
      %c0_i32_44 = arith.constant 0 : i32
      %67 = tpu.memref_slice %arg2[%66, %c0_i32_44] : memref<256x128xf32, #tpu.memory_space<any>> -> memref<1x128xf32, #tpu.memory_space<any>>
      %68 = tpu.memref_squeeze %67 : memref<1x128xf32, #tpu.memory_space<any>> -> memref<128xf32, #tpu.memory_space<any>>
      %c0_i32_45 = arith.constant 0 : i32
      %69 = tpu.memref_slice %arg4[%c3_i32_42, %arg6, %c0_i32_45] : memref<8x8x128xf32, #tpu.memory_space<vmem>> -> memref<1x1x128xf32, #tpu.memory_space<vmem>>
      %70 = tpu.memref_squeeze %69 : memref<1x1x128xf32, #tpu.memory_space<vmem>> -> memref<128xf32, #tpu.memory_space<vmem>>
      %71 = tpu.memref_slice %arg5[%c3_i32_43] : memref<8x!tpu.dma_semaphore, #tpu.memory_space<semaphore_mem>> -> memref<1x!tpu.dma_semaphore, #tpu.memory_space<semaphore_mem>>
      %72 = tpu.memref_squeeze %71 : memref<1x!tpu.dma_semaphore, #tpu.memory_space<semaphore_mem>> -> memref<!tpu.dma_semaphore, #tpu.memory_space<semaphore_mem>>
      tpu.wait_dma2 semaphore(%72 : memref<!tpu.dma_semaphore, #tpu.memory_space<semaphore_mem>>) src(%68 : memref<128xf32, #tpu.memory_space<any>>) dst(%70 : memref<128xf32, #tpu.memory_space<vmem>>)
      %73 = arith.addi %0, %arg6 : i32
      %c8_i32_46 = arith.constant 8 : i32
      %74 = arith.muli %73, %c8_i32_46 : i32
      %c4_i32 = arith.constant 4 : i32
      %75 = arith.addi %74, %c4_i32 : i32
      %76 = arith.index_cast %75 : i32 to index
      %77 = memref.load %arg1[%76] : memref<128xi32, #tpu.memory_space<smem>>
      %c4_i32_47 = arith.constant 4 : i32
      %c4_i32_48 = arith.constant 4 : i32
      %c0_i32_49 = arith.constant 0 : i32
      %78 = tpu.memref_slice %arg2[%77, %c0_i32_49] : memref<256x128xf32, #tpu.memory_space<any>> -> memref<1x128xf32, #tpu.memory_space<any>>
      %79 = tpu.memref_squeeze %78 : memref<1x128xf32, #tpu.memory_space<any>> -> memref<128xf32, #tpu.memory_space<any>>
      %c0_i32_50 = arith.constant 0 : i32
      %80 = tpu.memref_slice %arg4[%c4_i32_47, %arg6, %c0_i32_50] : memref<8x8x128xf32, #tpu.memory_space<vmem>> -> memref<1x1x128xf32, #tpu.memory_space<vmem>>
      %81 = tpu.memref_squeeze %80 : memref<1x1x128xf32, #tpu.memory_space<vmem>> -> memref<128xf32, #tpu.memory_space<vmem>>
      %82 = tpu.memref_slice %arg5[%c4_i32_48] : memref<8x!tpu.dma_semaphore, #tpu.memory_space<semaphore_mem>> -> memref<1x!tpu.dma_semaphore, #tpu.memory_space<semaphore_mem>>
      %83 = tpu.memref_squeeze %82 : memref<1x!tpu.dma_semaphore, #tpu.memory_space<semaphore_mem>> -> memref<!tpu.dma_semaphore, #tpu.memory_space<semaphore_mem>>
      tpu.wait_dma2 semaphore(%83 : memref<!tpu.dma_semaphore, #tpu.memory_space<semaphore_mem>>) src(%79 : memref<128xf32, #tpu.memory_space<any>>) dst(%81 : memref<128xf32, #tpu.memory_space<vmem>>)
      %84 = arith.addi %0, %arg6 : i32
      %c8_i32_51 = arith.constant 8 : i32
      %85 = arith.muli %84, %c8_i32_51 : i32
      %c5_i32 = arith.constant 5 : i32
      %86 = arith.addi %85, %c5_i32 : i32
      %87 = arith.index_cast %86 : i32 to index
      %88 = memref.load %arg1[%87] : memref<128xi32, #tpu.memory_space<smem>>
      %c5_i32_52 = arith.constant 5 : i32
      %c5_i32_53 = arith.constant 5 : i32
      %c0_i32_54 = arith.constant 0 : i32
      %89 = tpu.memref_slice %arg2[%88, %c0_i32_54] : memref<256x128xf32, #tpu.memory_space<any>> -> memref<1x128xf32, #tpu.memory_space<any>>
      %90 = tpu.memref_squeeze %89 : memref<1x128xf32, #tpu.memory_space<any>> -> memref<128xf32, #tpu.memory_space<any>>
      %c0_i32_55 = arith.constant 0 : i32
      %91 = tpu.memref_slice %arg4[%c5_i32_52, %arg6, %c0_i32_55] : memref<8x8x128xf32, #tpu.memory_space<vmem>> -> memref<1x1x128xf32, #tpu.memory_space<vmem>>
      %92 = tpu.memref_squeeze %91 : memref<1x1x128xf32, #tpu.memory_space<vmem>> -> memref<128xf32, #tpu.memory_space<vmem>>
      %93 = tpu.memref_slice %arg5[%c5_i32_53] : memref<8x!tpu.dma_semaphore, #tpu.memory_space<semaphore_mem>> -> memref<1x!tpu.dma_semaphore, #tpu.memory_space<semaphore_mem>>
      %94 = tpu.memref_squeeze %93 : memref<1x!tpu.dma_semaphore, #tpu.memory_space<semaphore_mem>> -> memref<!tpu.dma_semaphore, #tpu.memory_space<semaphore_mem>>
      tpu.wait_dma2 semaphore(%94 : memref<!tpu.dma_semaphore, #tpu.memory_space<semaphore_mem>>) src(%90 : memref<128xf32, #tpu.memory_space<any>>) dst(%92 : memref<128xf32, #tpu.memory_space<vmem>>)
      %95 = arith.addi %0, %arg6 : i32
      %c8_i32_56 = arith.constant 8 : i32
      %96 = arith.muli %95, %c8_i32_56 : i32
      %c6_i32 = arith.constant 6 : i32
      %97 = arith.addi %96, %c6_i32 : i32
      %98 = arith.index_cast %97 : i32 to index
      %99 = memref.load %arg1[%98] : memref<128xi32, #tpu.memory_space<smem>>
      %c6_i32_57 = arith.constant 6 : i32
      %c6_i32_58 = arith.constant 6 : i32
      %c0_i32_59 = arith.constant 0 : i32
      %100 = tpu.memref_slice %arg2[%99, %c0_i32_59] : memref<256x128xf32, #tpu.memory_space<any>> -> memref<1x128xf32, #tpu.memory_space<any>>
      %101 = tpu.memref_squeeze %100 : memref<1x128xf32, #tpu.memory_space<any>> -> memref<128xf32, #tpu.memory_space<any>>
      %c0_i32_60 = arith.constant 0 : i32
      %102 = tpu.memref_slice %arg4[%c6_i32_57, %arg6, %c0_i32_60] : memref<8x8x128xf32, #tpu.memory_space<vmem>> -> memref<1x1x128xf32, #tpu.memory_space<vmem>>
      %103 = tpu.memref_squeeze %102 : memref<1x1x128xf32, #tpu.memory_space<vmem>> -> memref<128xf32, #tpu.memory_space<vmem>>
      %104 = tpu.memref_slice %arg5[%c6_i32_58] : memref<8x!tpu.dma_semaphore, #tpu.memory_space<semaphore_mem>> -> memref<1x!tpu.dma_semaphore, #tpu.memory_space<semaphore_mem>>
      %105 = tpu.memref_squeeze %104 : memref<1x!tpu.dma_semaphore, #tpu.memory_space<semaphore_mem>> -> memref<!tpu.dma_semaphore, #tpu.memory_space<semaphore_mem>>
      tpu.wait_dma2 semaphore(%105 : memref<!tpu.dma_semaphore, #tpu.memory_space<semaphore_mem>>) src(%101 : memref<128xf32, #tpu.memory_space<any>>) dst(%103 : memref<128xf32, #tpu.memory_space<vmem>>)
      %106 = arith.addi %0, %arg6 : i32
      %c8_i32_61 = arith.constant 8 : i32
      %107 = arith.muli %106, %c8_i32_61 : i32
      %c7_i32 = arith.constant 7 : i32
      %108 = arith.addi %107, %c7_i32 : i32
      %109 = arith.index_cast %108 : i32 to index
      %110 = memref.load %arg1[%109] : memref<128xi32, #tpu.memory_space<smem>>
      %c7_i32_62 = arith.constant 7 : i32
      %c7_i32_63 = arith.constant 7 : i32
      %c0_i32_64 = arith.constant 0 : i32
      %111 = tpu.memref_slice %arg2[%110, %c0_i32_64] : memref<256x128xf32, #tpu.memory_space<any>> -> memref<1x128xf32, #tpu.memory_space<any>>
      %112 = tpu.memref_squeeze %111 : memref<1x128xf32, #tpu.memory_space<any>> -> memref<128xf32, #tpu.memory_space<any>>
      %c0_i32_65 = arith.constant 0 : i32
      %113 = tpu.memref_slice %arg4[%c7_i32_62, %arg6, %c0_i32_65] : memref<8x8x128xf32, #tpu.memory_space<vmem>> -> memref<1x1x128xf32, #tpu.memory_space<vmem>>
      %114 = tpu.memref_squeeze %113 : memref<1x1x128xf32, #tpu.memory_space<vmem>> -> memref<128xf32, #tpu.memory_space<vmem>>
      %115 = tpu.memref_slice %arg5[%c7_i32_63] : memref<8x!tpu.dma_semaphore, #tpu.memory_space<semaphore_mem>> -> memref<1x!tpu.dma_semaphore, #tpu.memory_space<semaphore_mem>>
      %116 = tpu.memref_squeeze %115 : memref<1x!tpu.dma_semaphore, #tpu.memory_space<semaphore_mem>> -> memref<!tpu.dma_semaphore, #tpu.memory_space<semaphore_mem>>
      tpu.wait_dma2 semaphore(%116 : memref<!tpu.dma_semaphore, #tpu.memory_space<semaphore_mem>>) src(%112 : memref<128xf32, #tpu.memory_space<any>>) dst(%114 : memref<128xf32, #tpu.memory_space<vmem>>)
    }
    %c8_i32_5 = arith.constant 8 : i32
    %c0 = arith.constant 0 : index
    %c0_6 = arith.constant 0 : index
    %c0_7 = arith.constant 0 : index
    %3 = vector.load %arg4[%c0, %c0_6, %c0_7] : memref<8x8x128xf32, #tpu.memory_space<vmem>>, vector<1x8x128xf32>
    %4 = vector.shape_cast %3 : vector<1x8x128xf32> to vector<8x128xf32>
    %c1 = arith.constant 1 : index
    %c0_8 = arith.constant 0 : index
    %c0_9 = arith.constant 0 : index
    %5 = vector.load %arg4[%c1, %c0_8, %c0_9] : memref<8x8x128xf32, #tpu.memory_space<vmem>>, vector<1x8x128xf32>
    %6 = vector.shape_cast %5 : vector<1x8x128xf32> to vector<8x128xf32>
    %7 = arith.addf %4, %6 : vector<8x128xf32>
    %c2 = arith.constant 2 : index
    %c0_10 = arith.constant 0 : index
    %c0_11 = arith.constant 0 : index
    %8 = vector.load %arg4[%c2, %c0_10, %c0_11] : memref<8x8x128xf32, #tpu.memory_space<vmem>>, vector<1x8x128xf32>
    %9 = vector.shape_cast %8 : vector<1x8x128xf32> to vector<8x128xf32>
    %10 = arith.addf %7, %9 : vector<8x128xf32>
    %c3 = arith.constant 3 : index
    %c0_12 = arith.constant 0 : index
    %c0_13 = arith.constant 0 : index
    %11 = vector.load %arg4[%c3, %c0_12, %c0_13] : memref<8x8x128xf32, #tpu.memory_space<vmem>>, vector<1x8x128xf32>
    %12 = vector.shape_cast %11 : vector<1x8x128xf32> to vector<8x128xf32>
    %13 = arith.addf %10, %12 : vector<8x128xf32>
    %c4 = arith.constant 4 : index
    %c0_14 = arith.constant 0 : index
    %c0_15 = arith.constant 0 : index
    %14 = vector.load %arg4[%c4, %c0_14, %c0_15] : memref<8x8x128xf32, #tpu.memory_space<vmem>>, vector<1x8x128xf32>
    %15 = vector.shape_cast %14 : vector<1x8x128xf32> to vector<8x128xf32>
    %16 = arith.addf %13, %15 : vector<8x128xf32>
    %c5 = arith.constant 5 : index
    %c0_16 = arith.constant 0 : index
    %c0_17 = arith.constant 0 : index
    %17 = vector.load %arg4[%c5, %c0_16, %c0_17] : memref<8x8x128xf32, #tpu.memory_space<vmem>>, vector<1x8x128xf32>
    %18 = vector.shape_cast %17 : vector<1x8x128xf32> to vector<8x128xf32>
    %19 = arith.addf %16, %18 : vector<8x128xf32>
    %c6 = arith.constant 6 : index
    %c0_18 = arith.constant 0 : index
    %c0_19 = arith.constant 0 : index
    %20 = vector.load %arg4[%c6, %c0_18, %c0_19] : memref<8x8x128xf32, #tpu.memory_space<vmem>>, vector<1x8x128xf32>
    %21 = vector.shape_cast %20 : vector<1x8x128xf32> to vector<8x128xf32>
    %22 = arith.addf %19, %21 : vector<8x128xf32>
    %c7 = arith.constant 7 : index
    %c0_20 = arith.constant 0 : index
    %c0_21 = arith.constant 0 : index
    %23 = vector.load %arg4[%c7, %c0_20, %c0_21] : memref<8x8x128xf32, #tpu.memory_space<vmem>>, vector<1x8x128xf32>
    %24 = vector.shape_cast %23 : vector<1x8x128xf32> to vector<8x128xf32>
    %25 = arith.addf %22, %24 : vector<8x128xf32>
    %cst = arith.constant 1.250000e-01 : f32
    %26 = vector.broadcast %cst : f32 to vector<8x128xf32>
    %27 = arith.mulf %25, %26 : vector<8x128xf32>
    %c0_22 = arith.constant 0 : index
    %c0_23 = arith.constant 0 : index
    %28 = vector.load %arg3[%c0_22, %c0_23] : memref<8x128xf32, #tpu.memory_space<vmem>>, vector<8x128xf32>
    tpu.vector_store %arg3[%c0_22, %c0_23], %27 {strides = array<i32>} : memref<8x128xf32, #tpu.memory_space<vmem>>, vector<8x128xf32>,
    return
  }
  func.func @transform_1(%arg0: i32, %arg1: memref<128xi32, #tpu.memory_space<smem>>) -> (i32, i32) {
    %c0_i32 = arith.constant 0 : i32
    %c0_i32_0 = arith.constant 0 : i32
    return %arg0, %c0_i32 : i32, i32
  }
}

</mosaic_0001>

<bundles_post_ra>
// kernel: tpu_custom_call.1
= control target key start
LH: loop header
LB: loop body
LE: loop exit
PB: predicated region body
PF: predicated region fallthrough
CT: control target
= control target key end

     0   :  { %s1073_s0 = inlined_call_operand.hbm [shape: s32[128], index: 0, kind: input, shape index: {}]   ;;  %s1074_s1 = inlined_call_operand.hbm [shape: f32[256,128], index: 1, kind: input, shape index: {}]   ;;  %s1075_s2 = inlined_call_operand.hbm [shape: f32[16,128], index: 2, kind: output, shape index: {}]  }
   0x1   :  { %s499_s11 = scalar_lea.hbm %s1073_s0, 16 }
   0x2   :  { %p500_p0 = scmp.ne.s32.totalorder %s1073_s0, %s499_s11  ;;  %p503_p1 = scmp.lt.u32.totalorder %s499_s11, %s1073_s0 }
   0x4   :  { %p505_p2 = pnand %p503_p1, %p500_p0 }
   0x6   :  { %508 = shalt.err (!%p505_p2)  }
   0x7   :  { %s791_s16 = smov [#allocation5]  }
   0x8   :  { %8 = dma.hbm_to_smem %s1073_s0, 16, %s791_s16, [#allocation4] }
   0x9   :  { %749 = dma.done.wait [#allocation4], 16 }
   0xa   :  { %750 = vsyncadd [#allocation4], 4294967280 }
   0xb   :  { %10 = sfence }
   0xc   :  { %11 = vsyncpa [#allocation7], 0 }
   0xd   :  { %13 = vsyncpa [#allocation7 + $0x1], 0  ;;  %s821_s19 = smov 0   ;;  %s823_s20 = smov 0  }
   0xe   :  { %s825_s21 = smov 0  }
   0xf LB: > { %s425_s0 = sadd.s32 4294967295, %s781_s21   ;;  %s838_s22 = sadd.s32 1, %s781_s21   ;;  %s781_s21 = sphi %s825_s21, %s1088_s21   ;;  %s777_s20 = sphi %s823_s20, %s1087_s20   ;;  %s773_s19 = sphi %s821_s19, %s1086_s19  }
  0x10   : > { %s22_s23 = ssub.s32 %s781_s21, %s838_s22  ;;  %s25_s24 = sadd.s32 1, %s777_s20 }
  0x11   : > { %p23_p3 = scmp.eq.s32.totalorder %s22_s23, 0  ;;  %p426_p4 = scmp.ne.s32.totalorder %s22_s23, 0 }
  0x12   : > { %p29_p5 = scmp.eq.s32.totalorder %s781_s21, 1  ;;  %p34_p6 = scmp.ne.s32.totalorder %s777_s20, %s773_s19 }
  0x13   : > { %s847_s25 = scalar_select %p23_p3, %s777_s20, %s25_s24  }
  0x14   : > { %p849_p7 = por %p426_p4, %p29_p5  ;;  %p35_p8 = scmp.eq.s32.totalorder %s425_s0, 1 }
  0x15   : > { %1077 = sst [smem:[#allocation36_spill]] %s847_s25  ;;  %p427_p10 = scmp.ge.s32.totalorder %s781_s21, 2 }
  0x16   : > { %p853_p9 = por %p35_p8, %p34_p6  ;;  %s1076_s28 = sand.u32 (!%p427_p10), 1, %s777_s20  }
  0x17   : > { %44 = sbr.rel (%p427_p10) target bundleno = 271 (0x10f), region = 12  ;;  %s862_s30 = sshll.u32 (!%p427_p10), %s1076_s28, 3 }
  0x18   : > { %s1079_s27 = scalar_select %p853_p9, 1, 0 }
  0x19   : > { %s865_s4 = smov (!%p427_p10), 0  }
  0x1e LB: >> { %s1080_s29 = sshll.u32 %s781_s21, 3  ;;  %s876_s7 = scalar_lea.vmem [#allocation2], %s785_s4  ;;  %s785_s4 = sphi %s865_s4, %s58_s4  }
  0x1f   : >> { %s59_s5 = sadd.s32 %s785_s4, %s1080_s29  ;;  %s72_s8 = sshll.u32 %s876_s7, 4  ;;  %s880_s8 = int_to_ptr.vmem [resolvable:$true] %s72_s8 }
  0x20   : >> { %s873_s6 = sshll.u32 %s59_s5, 3  ;;  %s371_s11 = scalar_lea.vmem %s876_s7, 8 [#allocation2] }
  0x21   : >> { %s61_s9 = sld [smem:[#allocation5 + %s873_s6]]  ;;  %s76_s10 = sadd.s32 1, %s873_s6 }
  0x22   : >> { %s884_s12 = sld [smem:[#allocation5 + %s76_s10]]  ;;  %s90_s13 = sshll.u32 %s371_s11, 4  ;;  %s886_s13 = int_to_ptr.vmem [resolvable:$true] %s90_s13 }
  0x23   : >> { %s94_s14 = sadd.s32 2, %s873_s6  ;;  %s375_s16 = scalar_lea.vmem %s876_s7, 16 [#allocation2] }
  0x24   : >> { %s889_s15 = sld [smem:[#allocation5 + %s94_s14]]  ;;  %s108_s17 = sshll.u32 %s375_s16, 4  ;;  %s893_s17 = int_to_ptr.vmem [resolvable:$true] %s108_s17 }
  0x25   : >> { %s112_s18 = sadd.s32 3, %s873_s6  ;;  %s903_s3 = scalar_lea.hbm %s1074_s1, 4096 }
  0x26   : >> { %s898_s29 = sld [smem:[#allocation5 + %s112_s18]] }
  0x27   : >> { %s431_s0 = sshll.u32 %s61_s9, 4 }
  0x28   : >> { %s63_s5 = scalar_lea.hbm %s1074_s1, %s431_s0 }
  0x29   : >> { %s509_s10 = scalar_lea.hbm %s63_s5, 16  ;;  %p512_p12 = scmp.lt.u32.totalorder %s63_s5, %s1074_s1 }
  0x2a   : >> { %p510_p11 = scmp.ne.s32.totalorder %s63_s5, %s509_s10  ;;  %p513_p13 = scmp.lt.u32.totalorder %s903_s3, %s509_s10 }
  0x2b   : >> { %p515_p1 = scmp.lt.u32.totalorder %s509_s10, %s63_s5 }
  0x2c   : >> { %p514_p0 = por %p513_p13, %p512_p12 }
  0x2e   : >> { %p516_p2 = por %p515_p1, %p514_p0 }
  0x30   : >> { %p517_p3 = pnand %p516_p2, %p510_p11 }
  0x32   : >> { %520 = shalt.err (!%p517_p3)  }
  0x33   : >> { %s521_s9 = scalar_lea.vmem %s880_s8, 16  ;;  %s792_s16 = smov [#allocation2]  }
  0x34   : >> { %p522_p4 = scmp.ne.s32.totalorder %s880_s8, %s521_s9  ;;  %s523_s28 = sshll.u32 %s792_s16, 4  ;;  %s911_s28 = int_to_ptr.vmem [resolvable:$false] %s523_s28 }
  0x35   : >> { %s914_s25 = scalar_lea.vmem %s911_s28, 1024  ;;  %p526_p5 = scmp.lt.s32.totalorder %s880_s8, %s911_s28 }
  0x36   : >> { %p527_p6 = scmp.lt.s32.totalorder %s914_s25, %s521_s9 }
  0x38   : >> { %p528_p8 = por %p527_p6, %p526_p5 }
  0x3a   : >> { %p529_p10 = pnand %p528_p8, %p522_p4 }
  0x3c   : >> { %532 = shalt.err (!%p529_p10)  }
  0x3d   : >> { %75 = dma.hbm_to_vmem [thread:$0]  %s63_s5, 16, %s880_s8, [#allocation3] }
  0x3e   : >> { %s432_s18 = sshll.u32 %s884_s12, 4  ;;  %s379_s0 = scalar_lea.vmem %s876_s7, 24 [#allocation2] }
  0x3f   : >> { %s79_s10 = scalar_lea.hbm %s1074_s1, %s432_s18  ;;  %s433_s11 = sshll.u32 %s889_s15, 4 }
  0x40   : >> { %s533_s14 = scalar_lea.hbm %s79_s10, 16  ;;  %p536_p12 = scmp.lt.u32.totalorder %s79_s10, %s1074_s1 }
  0x41   : >> { %p534_p11 = scmp.ne.s32.totalorder %s79_s10, %s533_s14  ;;  %p537_p13 = scmp.lt.u32.totalorder %s903_s3, %s533_s14 }
  0x42   : >> { %p539_p1 = scmp.lt.u32.totalorder %s533_s14, %s79_s10 }
  0x43   : >> { %p538_p0 = por %p537_p13, %p536_p12 }
  0x45   : >> { %p540_p2 = por %p539_p1, %p538_p0 }
  0x47   : >> { %p541_p3 = pnand %p540_p2, %p534_p11 }
  0x49   : >> { %544 = shalt.err (!%p541_p3)  }
  0x4a   : >> { %s545_s8 = scalar_lea.vmem %s886_s13, 16  ;;  %p550_p5 = scmp.lt.s32.totalorder %s886_s13, %s911_s28 }
  0x4b   : >> { %p546_p4 = scmp.ne.s32.totalorder %s886_s13, %s545_s8  ;;  %p551_p6 = scmp.lt.s32.totalorder %s914_s25, %s545_s8 }
  0x4d   : >> { %p552_p8 = por %p551_p6, %p550_p5 }
  0x4f   : >> { %p553_p10 = pnand %p552_p8, %p546_p4 }
  0x51   : >> { %556 = shalt.err (!%p553_p10)  }
  0x52   : >> { %93 = dma.hbm_to_vmem [thread:$0]  %s79_s10, 16, %s886_s13, [#allocation3 + $0x1] }
  0x53   : >> { %s97_s5 = scalar_lea.hbm %s1074_s1, %s433_s11  ;;  %s126_s18 = sshll.u32 %s379_s0, 4  ;;  %s127_s18 = int_to_ptr.vmem [resolvable:$true] %s126_s18 }
  0x54   : >> { %s557_s23 = scalar_lea.hbm %s97_s5, 16  ;;  %p560_p12 = scmp.lt.u32.totalorder %s97_s5, %s1074_s1 }
  0x55   : >> { %p558_p11 = scmp.ne.s32.totalorder %s97_s5, %s557_s23  ;;  %p561_p13 = scmp.lt.u32.totalorder %s903_s3, %s557_s23 }
  0x56   : >> { %p563_p1 = scmp.lt.u32.totalorder %s557_s23, %s97_s5 }
  0x57   : >> { %p562_p0 = por %p561_p13, %p560_p12 }
  0x59   : >> { %p564_p2 = por %p563_p1, %p562_p0 }
  0x5b   : >> { %p565_p3 = pnand %p564_p2, %p558_p11 }
  0x5d   : >> { %568 = shalt.err (!%p565_p3)  }
  0x5e   : >> { %s569_s13 = scalar_lea.vmem %s893_s17, 16  ;;  %p574_p5 = scmp.lt.s32.totalorder %s893_s17, %s911_s28 }
  0x5f   : >> { %p570_p4 = scmp.ne.s32.totalorder %s893_s17, %s569_s13  ;;  %p575_p6 = scmp.lt.s32.totalorder %s914_s25, %s569_s13 }
  0x61   : >> { %p576_p8 = por %p575_p6, %p574_p5 }
  0x63   : >> { %p577_p10 = pnand %p576_p8, %p570_p4 }
  0x65   : >> { %580 = shalt.err (!%p577_p10)  }
  0x66   : >> { %111 = dma.hbm_to_vmem [thread:$0]  %s97_s5, 16, %s893_s17, [#allocation3 + $0x2] }
  0x67   : >> { %s434_s0 = sshll.u32 %s898_s29, 4  ;;  %s130_s9 = sadd.s32 4, %s873_s6 }
  0x68   : >> { %s115_s16 = scalar_lea.hbm %s1074_s1, %s434_s0 }
  0x69   : >> { %s581_s8 = scalar_lea.hbm %s115_s16, 16  ;;  %p584_p12 = scmp.lt.u32.totalorder %s115_s16, %s1074_s1 }
  0x6a   : >> { %p582_p11 = scmp.ne.s32.totalorder %s115_s16, %s581_s8  ;;  %p585_p13 = scmp.lt.u32.totalorder %s903_s3, %s581_s8 }
  0x6b   : >> { %p587_p1 = scmp.lt.u32.totalorder %s581_s8, %s115_s16 }
  0x6c   : >> { %p586_p0 = por %p585_p13, %p584_p12 }
  0x6e   : >> { %p588_p2 = por %p587_p1, %p586_p0 }
  0x70   : >> { %p589_p3 = pnand %p588_p2, %p582_p11 }
  0x72   : >> { %592 = shalt.err (!%p589_p3)  }
  0x73   : >> { %s593_s17 = scalar_lea.vmem %s127_s18, 16  ;;  %p598_p5 = scmp.lt.s32.totalorder %s127_s18, %s911_s28 }
  0x74   : >> { %p594_p4 = scmp.ne.s32.totalorder %s127_s18, %s593_s17  ;;  %p599_p6 = scmp.lt.s32.totalorder %s914_s25, %s593_s17 }
  0x76   : >> { %p600_p8 = por %p599_p6, %p598_p5 }
  0x78   : >> { %p601_p10 = pnand %p600_p8, %p594_p4 }
  0x7a   : >> { %604 = shalt.err (!%p601_p10)  }
  0x7b   : >> { %129 = dma.hbm_to_vmem [thread:$0]  %s115_s16, 16, %s127_s18, [#allocation3 + $0x3] }
  0x7c   : >> { %s131_s29 = sld [smem:[#allocation5 + %s130_s9]]  ;;  %s383_s5 = scalar_lea.vmem %s876_s7, 32 [#allocation2] }
  0x7d   : >> { %s144_s23 = sshll.u32 %s383_s5, 4  ;;  %s148_s24 = sadd.s32 5, %s873_s6  ;;  %s145_s23 = int_to_ptr.vmem [resolvable:$true] %s144_s23 }
  0x7e   : >> { %s962_s14 = sld [smem:[#allocation5 + %s148_s24]]  ;;  %s387_s13 = scalar_lea.vmem %s876_s7, 40 [#allocation2] }
  0x7f   : >> { %s166_s0 = sadd.s32 6, %s873_s6  ;;  %s162_s10 = sshll.u32 %s387_s13, 4  ;;  %s968_s10 = int_to_ptr.vmem [resolvable:$true] %s162_s10 }
  0x80   : >> { %s966_s11 = sld [smem:[#allocation5 + %s166_s0]]  ;;  %s391_s18 = scalar_lea.vmem %s876_s7, 48 [#allocation2] }
  0x81   : >> { %s180_s8 = sshll.u32 %s391_s18, 4  ;;  %s974_s8 = int_to_ptr.vmem [resolvable:$true] %s180_s8 }
  0x82   : >> { %s435_s16 = sshll.u32 %s131_s29, 4 }
  0x83   : >> { %s133_s9 = scalar_lea.hbm %s1074_s1, %s435_s16 }
  0x84   : >> { %s605_s17 = scalar_lea.hbm %s133_s9, 16  ;;  %p608_p12 = scmp.lt.u32.totalorder %s133_s9, %s1074_s1 }
  0x85   : >> { %p606_p11 = scmp.ne.s32.totalorder %s133_s9, %s605_s17  ;;  %p609_p13 = scmp.lt.u32.totalorder %s903_s3, %s605_s17 }
  0x86   : >> { %p611_p1 = scmp.lt.u32.totalorder %s605_s17, %s133_s9 }
  0x87   : >> { %p610_p0 = por %p609_p13, %p608_p12 }
  0x89   : >> { %p612_p2 = por %p611_p1, %p610_p0 }
  0x8b   : >> { %p613_p3 = pnand %p612_p2, %p606_p11 }
  0x8d   : >> { %616 = shalt.err (!%p613_p3)  }
  0x8e   : >> { %s617_s29 = scalar_lea.vmem %s145_s23, 16  ;;  %p622_p5 = scmp.lt.s32.totalorder %s145_s23, %s911_s28 }
  0x8f   : >> { %p618_p4 = scmp.ne.s32.totalorder %s145_s23, %s617_s29  ;;  %p623_p6 = scmp.lt.s32.totalorder %s914_s25, %s617_s29 }
  0x91   : >> { %p624_p8 = por %p623_p6, %p622_p5 }
  0x93   : >> { %p625_p10 = pnand %p624_p8, %p618_p4 }
  0x95   : >> { %628 = shalt.err (!%p625_p10)  }
  0x96   : >> { %147 = dma.hbm_to_vmem [thread:$0]  %s133_s9, 16, %s145_s23, [#allocation3 + $0x4] }
  0x97   : >> { %s436_s13 = sshll.u32 %s962_s14, 4  ;;  %s184_s0 = sadd.s32 7, %s873_s6 }
  0x98   : >> { %s151_s12 = scalar_lea.hbm %s1074_s1, %s436_s13  ;;  %s437_s15 = sshll.u32 %s966_s11, 4 }
  0x99   : >> { %s629_s17 = scalar_lea.hbm %s151_s12, 16  ;;  %p632_p12 = scmp.lt.u32.totalorder %s151_s12, %s1074_s1 }
  0x9a   : >> { %p630_p11 = scmp.ne.s32.totalorder %s151_s12, %s629_s17  ;;  %p633_p13 = scmp.lt.u32.totalorder %s903_s3, %s629_s17 }
  0x9b   : >> { %p635_p1 = scmp.lt.u32.totalorder %s629_s17, %s151_s12 }
  0x9c   : >> { %p634_p0 = por %p633_p13, %p632_p12 }
  0x9e   : >> { %p636_p2 = por %p635_p1, %p634_p0 }
  0xa0   : >> { %p637_p3 = pnand %p636_p2, %p630_p11 }
  0xa2   : >> { %640 = shalt.err (!%p637_p3)  }
  0xa3   : >> { %s641_s6 = scalar_lea.vmem %s968_s10, 16  ;;  %p646_p5 = scmp.lt.s32.totalorder %s968_s10, %s911_s28 }
  0xa4   : >> { %p642_p4 = scmp.ne.s32.totalorder %s968_s10, %s641_s6  ;;  %p647_p6 = scmp.lt.s32.totalorder %s914_s25, %s641_s6 }
  0xa6   : >> { %p648_p8 = por %p647_p6, %p646_p5 }
  0xa8   : >> { %p649_p10 = pnand %p648_p8, %p642_p4 }
  0xaa   : >> { %652 = shalt.err (!%p649_p10)  }
  0xab   : >> { %165 = dma.hbm_to_vmem [thread:$0]  %s151_s12, 16, %s968_s10, [#allocation3 + $0x5] }
  0xac   : >> { %s169_s11 = scalar_lea.hbm %s1074_s1, %s437_s15  ;;  %s185_s9 = sld [smem:[#allocation5 + %s184_s0]] }
  0xad   : >> { %s653_s29 = scalar_lea.hbm %s169_s11, 16  ;;  %p656_p12 = scmp.lt.u32.totalorder %s169_s11, %s1074_s1 }
  0xae   : >> { %p654_p11 = scmp.ne.s32.totalorder %s169_s11, %s653_s29  ;;  %p657_p13 = scmp.lt.u32.totalorder %s903_s3, %s653_s29 }
  0xaf   : >> { %p659_p1 = scmp.lt.u32.totalorder %s653_s29, %s169_s11 }
  0xb0   : >> { %p658_p0 = por %p657_p13, %p656_p12 }
  0xb2   : >> { %p660_p2 = por %p659_p1, %p658_p0 }
  0xb4   : >> { %p661_p3 = pnand %p660_p2, %p654_p11 }
  0xb6   : >> { %664 = shalt.err (!%p661_p3)  }
  0xb7   : >> { %s665_s10 = scalar_lea.vmem %s974_s8, 16  ;;  %p670_p5 = scmp.lt.s32.totalorder %s974_s8, %s911_s28 }
  0xb8   : >> { %p666_p4 = scmp.ne.s32.totalorder %s974_s8, %s665_s10  ;;  %p671_p6 = scmp.lt.s32.totalorder %s914_s25, %s665_s10 }
  0xba   : >> { %p672_p8 = por %p671_p6, %p670_p5 }
  0xbc   : >> { %p673_p10 = pnand %p672_p8, %p666_p4 }
  0xbe   : >> { %676 = shalt.err (!%p673_p10)  }
  0xbf   : >> { %183 = dma.hbm_to_vmem [thread:$0]  %s169_s11, 16, %s974_s8, [#allocation3 + $0x6] }
  0xc0   : >> { %s395_s0 = scalar_lea.vmem %s876_s7, 56 [#allocation2]  ;;  %s438_s12 = sshll.u32 %s185_s9, 4 }
  0xc1   : >> { %s198_s16 = sshll.u32 %s395_s0, 4  ;;  %s187_s5 = scalar_lea.hbm %s1074_s1, %s438_s12  ;;  %s199_s16 = int_to_ptr.vmem [resolvable:$true] %s198_s16 }
  0xc2   : >> { %s677_s24 = scalar_lea.hbm %s187_s5, 16  ;;  %p680_p12 = scmp.lt.u32.totalorder %s187_s5, %s1074_s1 }
  0xc3   : >> { %p678_p11 = scmp.ne.s32.totalorder %s187_s5, %s677_s24  ;;  %p681_p13 = scmp.lt.u32.totalorder %s903_s3, %s677_s24 }
  0xc4   : >> { %p683_p1 = scmp.lt.u32.totalorder %s677_s24, %s187_s5 }
  0xc5   : >> { %p682_p0 = por %p681_p13, %p680_p12 }
  0xc7   : >> { %p684_p2 = por %p683_p1, %p682_p0 }
  0xc9   : >> { %p685_p3 = pnand %p684_p2, %p678_p11 }
  0xcb   : >> { %688 = shalt.err (!%p685_p3)  }
  0xcc   : >> { %s689_s7 = scalar_lea.vmem %s199_s16, 16  ;;  %p694_p5 = scmp.lt.s32.totalorder %s199_s16, %s911_s28 }
  0xcd   : >> { %p690_p4 = scmp.ne.s32.totalorder %s199_s16, %s689_s7  ;;  %p695_p6 = scmp.lt.s32.totalorder %s914_s25, %s689_s7 }
  0xcf   : >> { %p696_p8 = por %p695_p6, %p694_p5 }
  0xd1   : >> { %p697_p10 = pnand %p696_p8, %p690_p4 }
  0xd3   : >> { %700 = shalt.err (!%p697_p10)  }
  0xd4   : >> { %201 = dma.hbm_to_vmem [thread:$0]  %s187_s5, 16, %s199_s16, [#allocation3 + $0x7] }
  0xd5   : >> { %s58_s4 = sadd.s32 1, %s785_s4  }
  0xd6   : >> { %p55_p9 = scmp.ge.s32.totalorder %s58_s4, 8  }
  0xd7   : > { %s787_s3 = smov (%p55_p9), 0  }
  0xd8   : > { %57 = sbr.rel (!%p55_p9) target bundleno = 30 (0x1e), region = 134 }
  0xdf LB: >> { %751 = dma.done.wait [#allocation3], 16  ;;  %s789_s3 = sphi %s787_s3, %s207_s3  }
  0xe0   : >> { %752 = vsyncadd [#allocation3], 4294967280 }
  0xe1   : >> { %753 = dma.done.wait [#allocation3 + $0x1], 16 }
  0xe2   : >> { %754 = vsyncadd [#allocation3 + $0x1], 4294967280 }
  0xe3   : >> { %755 = dma.done.wait [#allocation3 + $0x2], 16 }
  0xe4   : >> { %756 = vsyncadd [#allocation3 + $0x2], 4294967280 }
  0xe5   : >> { %757 = dma.done.wait [#allocation3 + $0x3], 16 }
  0xe6   : >> { %758 = vsyncadd [#allocation3 + $0x3], 4294967280 }
  0xe7   : >> { %759 = dma.done.wait [#allocation3 + $0x4], 16 }
  0xe8   : >> { %760 = vsyncadd [#allocation3 + $0x4], 4294967280 }
  0xe9   : >> { %761 = dma.done.wait [#allocation3 + $0x5], 16 }
  0xea   : >> { %762 = vsyncadd [#allocation3 + $0x5], 4294967280 }
  0xeb   : >> { %763 = dma.done.wait [#allocation3 + $0x6], 16 }
  0xec   : >> { %764 = vsyncadd [#allocation3 + $0x6], 4294967280 }
  0xed   : >> { %765 = dma.done.wait [#allocation3 + $0x7], 16 }
  0xee   : >> { %766 = vsyncadd [#allocation3 + $0x7], 4294967280  ;;  %s207_s3 = sadd.s32 1, %s789_s3  }
  0xef   : >> { %p204_p9 = scmp.ge.s32.totalorder %s207_s3, 8  }
  0xf0   : > { %v248_v0 = vld [vmem:[#allocation2] sm:$0xff] (%p204_p9)  ;;  %v250_v1 = vld [vmem:[#allocation2 + $0x8] sm:$0xff] (%p204_p9)  ;;  %v253_v2 = vld [vmem:[#allocation2 + $0x10] sm:$0xff] (%p204_p9)  ;;  %s440_s4 = sshll.u32 (%p204_p9), %s781_s21, 7  ;;  %s1081_s28 = scalar_lea.vmem (%p204_p9), [#allocation6], %s862_s30 }
  0xf1   : > { %206 = sbr.rel (!%p204_p9) target bundleno = 223 (0xdf), region = 145  ;;  %v251_v3 = vadd.f32 (%p204_p9), %v250_v1, %v248_v0  ;;  %v256_v4 = vld [vmem:[#allocation2 + $0x18] sm:$0xff] (%p204_p9)  ;;  %v259_v6 = vld [vmem:[#allocation2 + $0x20] sm:$0xff] (%p204_p9)  ;;  %v262_v8 = vld [vmem:[#allocation2 + $0x28] sm:$0xff] (%p204_p9)  ;;  %s286_s25 = sshll.u32 (%p204_p9), %s1081_s28, 4  ;;  %s1032_s25 = int_to_ptr.vmem [resolvable:$true] %s286_s25 }
  0xf2   : > { %v265_v10 = vld [vmem:[#allocation2 + $0x30] sm:$0xff] (%p204_p9)  ;;  %v268_v12 = vld [vmem:[#allocation2 + $0x38] sm:$0xff] (%p204_p9)  ;;  %s1030_s11 = scalar_lea.hbm (%p204_p9), %s1075_s2, %s440_s4  ;;  %s1082_s9 = smov (%p204_p9), %s1081_s28 }
  0xf3   : > { %v254_v5 = vadd.f32 (%p204_p9), %v253_v2, %v251_v3  ;;  %s1083_s29 = sand.u32 (%p204_p9), 1, %s777_s20   ;;  %s701_s18 = scalar_lea.vmem (%p204_p9), %s1032_s25, 128 }
  0xf4   : > { %s273_s13 = scalar_lea.sflag (%p204_p9), [#allocation7], %s1083_s29  ;;  %p702_p11 = scmp.ne.s32.totalorder (%p204_p9), %s1032_s25, %s701_s18 }
  0xf5   : > { %v257_v7 = vadd.f32 (%p204_p9), %v256_v4, %v254_v5  ;;  %s793_s10 = smov (%p204_p9), [#allocation6]  }
  0xf6   : > { %p703_p12 = pnand (%p204_p9), %p702_p11, %p849_p7  ;;  %s705_s0 = sshll.u32 (%p204_p9), %s793_s10, 4  ;;  %s706_s0 = int_to_ptr.vmem [resolvable:$false] %s705_s0 }
  0xf7   : > { %v260_v9 = vadd.f32 (%p204_p9), %v259_v6, %v257_v7  ;;  %s707_s16 = scalar_lea.vmem (%p204_p9), %s706_s0, 256  ;;  %p708_p0 = scmp.lt.s32.totalorder (%p204_p9), %s1032_s25, %s706_s0 }
  0xf8   : > { %p704_p13 = pneg %p703_p12  ;;  %p709_p1 = scmp.lt.s32.totalorder %s707_s16, %s701_s18 }
  0xf9   : > { %v263_v11 = vadd.f32 %v262_v8, %v260_v9 }
  0xfa   : > { %p710_p2 = por %p709_p1, %p708_p0 }
  0xfb   : > { %v266_v13 = vadd.f32 %v265_v10, %v263_v11 }
  0xfc   : > { %p711_p3 = pnand %p710_p2, %p704_p13 }
  0xfd   : > { %v269_v14 = vadd.f32 %v268_v12, %v266_v13 }
  0xff   : > { %v270_v15 = vmul.f32 0.125, %v269_v14 }
 0x101   : > { %271 = vst [vmem:[%s1082_s9] sm:$0xff] %v270_v15 }
 0x102   : > { %714 = shalt.err (!%p711_p3)
}
 0x103   : > { %s715_s30 = scalar_lea.hbm %s1030_s11, 128  ;;  %s719_s17 = scalar_lea.hbm %s1075_s2, 256 }
 0x104   : > { %p716_p4 = scmp.ne.s32.totalorder %s1030_s11, %s715_s30  ;;  %p720_p8 = scmp.lt.u32.totalorder %s1030_s11, %s1075_s2 }
 0x105   : > { %p721_p10 = scmp.lt.u32.totalorder %s719_s17, %s715_s30  ;;  %p723_p11 = scmp.lt.u32.totalorder %s715_s30, %s1030_s11 }
 0x106   : > { %p717_p5 = pnand %p716_p4, %p849_p7 }
 0x107   : > { %p722_p9 = por %p721_p10, %p720_p8 }
 0x108   : > { %p718_p6 = pneg %p717_p5 }
 0x109   : > { %p724_p12 = por %p723_p11, %p722_p9 }
 0x10b   : > { %p725_p13 = pnand %p724_p12, %p718_p6 }
 0x10d   : > { %728 = shalt.err (!%p725_p13)
}
 0x10e   : > { %451 = dma.vmem_to_hbm [thread:$0]  (%p849_p7), %s1032_s25, 128, %s1030_s11, %s273_s13  }
 0x10f PF: > { %p457_p0 = scmp.ge.s32.totalorder %s781_s21, 1  ;;  %s298_s6 = sand.u32 1, %s773_s19  }
 0x110   : > { %p1084_p1 = scmp.ne.s32.totalorder %s1079_s27, 0  ;;  %s299_s23 = scalar_lea.sflag [#allocation7], %s298_s6 }
 0x112   : > { %p454_p2 = pnand %p457_p0, %p1084_p1 }
 0x114   : > { %768 = dma.done.wait (!%p454_p2), %s299_s23, 128  }
 0x115   : > { %770 = vsyncadd (!%p454_p2), %s299_s23, 4294967168  ;;  %s1085_s7 = sld [smem:[#allocation36_spill]]  ;;  %p16_p3 = scmp.ge.s32.totalorder %s838_s22, 3  }
 0x116   : > { %s1086_s19 = smov %s777_s20  ;;  %s1088_s21 = smov %s838_s22 }
 0x117   :  { %18 = sbr.rel (!%p16_p3) target bundleno = 15 (0xf), region = 156 }
 0x11b   : > { %s1087_s20 = smov %s1085_s7 }
 0x11e   :  { %304 = vsyncpa [#allocation7], 1 }
 0x11f   :  { %306 = vsyncpa [#allocation7 + $0x1], 1 }
 0x120   :  { %307 = vsyncmov [#allocation3] }
 0x123   :  { %s308_s21 = vpop.sfrf %307 }
 0x124   :  { %p443_p7 = scmp.ne.s32.totalorder %s308_s21, 0 }
 0x126   :  { %312 = shalt.err (%p443_p7)  }
 0x127   :  { %314 = vsyncmov [#allocation3 + $0x1] }
 0x12a   :  { %s315_s26 = vpop.sfrf %314 }
 0x12b   :  { %p444_p4 = scmp.ne.s32.totalorder %s315_s26, 0 }
 0x12d   :  { %319 = shalt.err (%p444_p4)  }
 0x12e   :  { %321 = vsyncmov [#allocation3 + $0x2] }
 0x131   :  { %s322_s27 = vpop.sfrf %321 }
 0x132   :  { %p445_p5 = scmp.ne.s32.totalorder %s322_s27, 0 }
 0x134   :  { %326 = shalt.err (%p445_p5)  }
 0x135   :  { %328 = vsyncmov [#allocation3 + $0x3] }
 0x138   :  { %s329_s3 = vpop.sfrf %328 }
 0x139   :  { %p446_p6 = scmp.ne.s32.totalorder %s329_s3, 0 }
 0x13b   :  { %333 = shalt.err (%p446_p6)  }
 0x13c   :  { %335 = vsyncmov [#allocation3 + $0x4] }
 0x13f   :  { %s336_s22 = vpop.sfrf %335 }
 0x140   :  { %p447_p8 = scmp.ne.s32.totalorder %s336_s22, 0 }
 0x142   :  { %340 = shalt.err (%p447_p8)  }
 0x143   :  { %342 = vsyncmov [#allocation3 + $0x5] }
 0x146   :  { %s343_s1 = vpop.sfrf %342 }
 0x147   :  { %p448_p10 = scmp.ne.s32.totalorder %s343_s1, 0 }
 0x149   :  { %347 = shalt.err (%p448_p10)  }
 0x14a   :  { %349 = vsyncmov [#allocation3 + $0x6] }
 0x14d   :  { %s350_s2 = vpop.sfrf %349 }
 0x14e   :  { %p449_p9 = scmp.ne.s32.totalorder %s350_s2, 0 }
 0x150   :  { %354 = shalt.err (%p449_p9)  }
 0x151   :  { %356 = vsyncmov [#allocation3 + $0x7] }
 0x154   :  { %s357_s19 = vpop.sfrf %356 }
 0x155   :  { %p450_p11 = scmp.ne.s32.totalorder %s357_s19, 0 }
 0x157   :  { %361 = shalt.err (%p450_p11)  }

</bundles_post_ra>
